<compile_context>
chip_gen: v6e
topology: v6e:2x2x1
jax: 0.10.0
libtpu: 0.0.40
codegen_flags: <defaults>
</compile_context>

<pallas_src>
import jax
import jax.numpy as jnp
from jax.experimental import pallas as pl
from jax.experimental.pallas import tpu as pltpu


def _round_up(x, m):
    return ((x + m - 1) // m) * m


# ---------------- kernel 1: one-time weight clamp + bf16 cast ----------------
def _clamp_cast_kernel(w_ref, pos_ref, neg_ref, o_ref):
    # w_ref:   (tkc, tnc) f32   transposed weight tile (Din rows, Dout cols)
    # pos_ref: (tkc, 1)   f32   1.0 where row-index (input dim) is positive-constrained
    # neg_ref: (tkc, 1)   f32   1.0 where row-index is negative-constrained
    w = w_ref[...]
    pos = pos_ref[...]          # broadcasts over lanes (Dout)
    neg = neg_ref[...]
    # Fused clamp (no selects):
    #   pos only -> max(w,0); neg only -> min(w,0); both -> 0; neither -> w
    w = w - pos * jnp.minimum(w, 0.0) - neg * jnp.maximum(w, 0.0)
    o_ref[...] = w.astype(o_ref.dtype)


def _clamp_weight(w_t, pos_mask, neg_mask, *, tkc, tnc, out_dtype):
    K, N = w_t.shape
    return pl.pallas_call(
        _clamp_cast_kernel,
        out_shape=jax.ShapeDtypeStruct((K, N), out_dtype),
        grid_spec=pltpu.PrefetchScalarGridSpec(
            num_scalar_prefetch=0,
            grid=(K // tkc, N // tnc),
            in_specs=[
                pl.BlockSpec((tkc, tnc), lambda i, j: (i, j)),
                pl.BlockSpec((tkc, 1), lambda i, j: (i, 0)),
                pl.BlockSpec((tkc, 1), lambda i, j: (i, 0)),
            ],
            out_specs=pl.BlockSpec((tkc, tnc), lambda i, j: (i, j)),
        ),
        compiler_params=pltpu.CompilerParams(
            dimension_semantics=("parallel", "parallel")),
    )(w_t, pos_mask, neg_mask)


# ---------------- kernel 2: tiled bf16 matmul + bias (f32 accumulate) --------
def _matmul_bias_kernel(x_ref, w_ref, b_ref, o_ref, acc_ref):
    # x_ref: (tm, tk) bf16 | w_ref: (tk, tn) bf16 | b_ref: (1, tn) f32
    # o_ref: (tm, tn) f32  | acc_ref: (tm, tn) f32 scratch
    k = pl.program_id(2)

    @pl.when(k == 0)
    def _():
        acc_ref[...] = jnp.zeros_like(acc_ref)

    acc_ref[...] += jnp.dot(x_ref[...], w_ref[...],
                            preferred_element_type=jnp.float32)

    @pl.when(k == pl.num_programs(2) - 1)
    def _():
        o_ref[...] = (acc_ref[...] + b_ref[...]).astype(o_ref.dtype)


# ---------------- wrapper ----------------
def linear_constraint_forward(x, weight, bias, positive_indice, negative_indice,
                              *, tm_max=512, tn_max=512, tk_max=1024):
    """Pallas-backed forward pass of LinearConstraint_Base."""
    f32 = jnp.float32
    compute_dtype = jnp.bfloat16

    dim_output, dim_input = weight.shape
    orig_lead = x.shape[:-1]
    x2 = x.reshape(-1, dim_input)
    batch = x2.shape[0]

    # Tile sizes (padded dims are exact multiples; small shapes get small tiles).
    tm = min(tm_max, _round_up(batch, 16))        # bf16 sublane packing friendly
    tn = min(tn_max, _round_up(dim_output, 128))  # lane-dense output stores
    tk = min(tk_max, _round_up(dim_input, 128))
    M = _round_up(batch, tm)
    N = _round_up(dim_output, tn)
    K = _round_up(dim_input, tk)

    # --- one-time weight prep: transpose to NN layout, pad, build row masks ---
    w_t = jnp.zeros((K, N), f32).at[:dim_input, :dim_output].set(
        weight.astype(f32).T)
    pos_mask = jnp.zeros((K, 1), f32)
    if positive_indice is not None:
        pos_mask = pos_mask.at[jnp.asarray(positive_indice), 0].set(1.0)
    neg_mask = jnp.zeros((K, 1), f32)
    if negative_indice is not None:
        neg_mask = neg_mask.at[jnp.asarray(negative_indice), 0].set(1.0)

    w_clamped = _clamp_weight(w_t, pos_mask, neg_mask,
                              tkc=min(512, K), tnc=min(512, N),
                              out_dtype=compute_dtype)

    # --- pad activations / bias ---
    x_pad = jnp.zeros((M, K), compute_dtype).at[:batch, :dim_input].set(
        x2.astype(compute_dtype))
    b_pad = jnp.zeros((1, N), f32)
    if bias is not None:
        b_pad = b_pad.at[0, :dim_output].set(bias.astype(f32))

    grid = (M // tm, N // tn, K // tk)
    cost = pl.CostEstimate(
        flops=2 * M * N * K,
        transcendentals=0,
        bytes_accessed=(M * K + K * N) * 2 + (N + M * N) * 4,
    )

    out = pl.pallas_call(
        _matmul_bias_kernel,
        out_shape=jax.ShapeDtypeStruct((M, N), f32),
        grid_spec=pltpu.PrefetchScalarGridSpec(
            num_scalar_prefetch=0,
            grid=grid,
            in_specs=[
                pl.BlockSpec((tm, tk), lambda i, j, k: (i, k)),   # x
                pl.BlockSpec((tk, tn), lambda i, j, k: (k, j)),   # w (K, N)
                pl.BlockSpec((1, tn), lambda i, j, k: (0, j)),    # bias
            ],
            out_specs=pl.BlockSpec((tm, tn), lambda i, j, k: (i, j)),
            scratch_shapes=[pltpu.VMEM((tm, tn), jnp.float32)],
        ),
        compiler_params=pltpu.CompilerParams(
            dimension_semantics=("parallel", "parallel", "arbitrary"),
            vmem_limit_bytes=32 * 1024 * 1024,
        ),
        cost_estimate=cost,
    )(x_pad, w_clamped, b_pad)

    out = out[:batch, :dim_output].reshape(orig_lead + (dim_output,))
    # torch's .squeeze(-1): only drops the last axis if it has size 1.
    if out.shape[-1] == 1:
        out = out.squeeze(-1)
    return out


# ---------------- references ----------------
def _clamped_weight_ref(weight, positive_indice, negative_indice):
    w = weight.astype(jnp.float32)
    if positive_indice is not None:
        idx = jnp.asarray(positive_indice)
        w = w.at[:, idx].set(jnp.maximum(w[:, idx], 0.0))
    if negative_indice is not None:
        idx = jnp.asarray(negative_indice)
        w = w.at[:, idx].set(jnp.minimum(w[:, idx], 0.0))
    return w


def _reference_f32(x, weight, bias, positive_indice, negative_indice):
    w = _clamped_weight_ref(weight, positive_indice, negative_indice)
    out = x.astype(jnp.float32) @ w.T
    if bias is not None:
        out = out + bias.astype(jnp.float32)
    if out.shape[-1] == 1:
        out = out.squeeze(-1)
    return out


def _reference_bf16(x, weight, bias, positive_indice, negative_indice):
    # Mimics the kernel's bf16-input / f32-accumulate matmul.
    w = _clamped_weight_ref(weight, positive_indice, negative_indice)
    xb = x.astype(jnp.bfloat16).astype(jnp.float32)
    wb = w.astype(jnp.bfloat16).astype(jnp.float32)
    out = xb @ wb.T
    if bias is not None:
        out = out + bias.astype(jnp.float32)
    if out.shape[-1] == 1:
        out = out.squeeze(-1)
    return out


if __name__ == "__main__":
    key = jax.random.PRNGKey(0)
    k_x, k_w, k_b, k_w1, k_b1 = jax.random.split(key, 5)

    batch = 8
    dim_input = 32
    dim_output = 8

    x = jax.random.normal(k_x, (batch, dim_input), dtype=jnp.float32)
    weight = jax.random.normal(k_w, (dim_output, dim_input), dtype=jnp.float32) * 0.1
    bias = jax.random.normal(k_b, (dim_output,), dtype=jnp.float32) * 0.1

    positive_indice = [0, 1, 2, 3, 4, 5]
    negative_indice = [10, 11, 12, 13]

    out = linear_constraint_forward(x, weight, bias, positive_indice, negative_indice)
    out = jax.block_until_ready(out)

    ref_bf16 = _reference_bf16(x, weight, bias, positive_indice, negative_indice)
    ref_f32 = _reference_f32(x, weight, bias, positive_indice, negative_indice)
    assert out.shape == ref_f32.shape
    assert jnp.allclose(out, ref_bf16, atol=1e-4, rtol=1e-4), "mismatch vs bf16 reference"
    assert jnp.allclose(out, ref_f32, atol=5e-2, rtol=5e-2), "mismatch vs f32 reference"

    # dim_output = 1 exercises the squeeze(-1) path.
    weight1 = jax.random.normal(k_w1, (1, dim_input), dtype=jnp.float32) * 0.1
    bias1 = jax.random.normal(k_b1, (1,), dtype=jnp.float32) * 0.1
    out1 = linear_constraint_forward(x, weight1, bias1, positive_indice, negative_indice)
    out1 = jax.block_until_ready(out1)
    ref1 = _reference_bf16(x, weight1, bias1, positive_indice, negative_indice)
    assert out1.shape == (batch,)
    assert jnp.allclose(out1, ref1, atol=1e-4, rtol=1e-4), "mismatch (dim_output=1)"

    print("KERNEL_OK")
</pallas_src>

<mosaic_0001>
module attributes {stable_mosaic.version = 11 : i64} {
  func.func @_clamp_cast_kernel(%arg0: i32, %arg1: i32, %arg2: memref<128x128xf32, #tpu.memory_space<vmem>>, %arg3: memref<128x1xf32, #tpu.memory_space<vmem>>, %arg4: memref<128x1xf32, #tpu.memory_space<vmem>>, %arg5: memref<128x128xbf16, #tpu.memory_space<vmem>>) attributes {dimension_semantics = [#tpu.dimension_semantics<parallel>, #tpu.dimension_semantics<parallel>], iteration_bounds = array<i64: 1, 1>, scalar_prefetch = 0 : i64, scratch_operands = 0 : i64, tpu.core_type = #tpu.core_type<tc>, window_params = [{transform_indices = @transform_0, window_bounds = array<i64: 128, 128>}, {transform_indices = @transform_1, window_bounds = array<i64: 128, 1>}, {transform_indices = @transform_2, window_bounds = array<i64: 128, 1>}, {transform_indices = @transform_3, window_bounds = array<i64: 128, 128>}]} {
    %c0 = arith.constant 0 : index
    %c0_0 = arith.constant 0 : index
    %0 = vector.load %arg2[%c0, %c0_0] : memref<128x128xf32, #tpu.memory_space<vmem>>, vector<128x128xf32>
    %c0_1 = arith.constant 0 : index
    %c0_2 = arith.constant 0 : index
    %1 = vector.load %arg3[%c0_1, %c0_2] : memref<128x1xf32, #tpu.memory_space<vmem>>, vector<128x1xf32>
    %c0_3 = arith.constant 0 : index
    %c0_4 = arith.constant 0 : index
    %2 = vector.load %arg4[%c0_3, %c0_4] : memref<128x1xf32, #tpu.memory_space<vmem>>, vector<128x1xf32>
    %cst = arith.constant 0.000000e+00 : f32
    %3 = vector.broadcast %cst : f32 to vector<128x128xf32>
    %4 = arith.minimumf %0, %3 : vector<128x128xf32>
    %5 = vector.broadcast %1 : vector<128x1xf32> to vector<128x128xf32>
    %6 = arith.mulf %5, %4 : vector<128x128xf32>
    %7 = arith.subf %0, %6 : vector<128x128xf32>
    %cst_5 = arith.constant 0.000000e+00 : f32
    %8 = vector.broadcast %cst_5 : f32 to vector<128x128xf32>
    %9 = arith.maximumf %0, %8 : vector<128x128xf32>
    %10 = vector.broadcast %2 : vector<128x1xf32> to vector<128x128xf32>
    %11 = arith.mulf %10, %9 : vector<128x128xf32>
    %12 = arith.subf %7, %11 : vector<128x128xf32>
    %13 = arith.truncf %12 : vector<128x128xf32> to vector<128x128xbf16>
    %c0_6 = arith.constant 0 : index
    %c0_7 = arith.constant 0 : index
    %14 = vector.load %arg5[%c0_6, %c0_7] : memref<128x128xbf16, #tpu.memory_space<vmem>>, vector<128x128xbf16>
    tpu.vector_store %arg5[%c0_6, %c0_7], %13 {strides = array<i32>} : memref<128x128xbf16, #tpu.memory_space<vmem>>, vector<128x128xbf16>,
    return
  }
  func.func @transform_0(%arg0: i32, %arg1: i32) -> (i32, i32) {
    %c0_i32 = arith.constant 0 : i32
    return %arg0, %arg1 : i32, i32
  }
  func.func @transform_1(%arg0: i32, %arg1: i32) -> (i32, i32) {
    %c0_i32 = arith.constant 0 : i32
    %c0_i32_0 = arith.constant 0 : i32
    return %arg0, %c0_i32 : i32, i32
  }
  func.func @transform_2(%arg0: i32, %arg1: i32) -> (i32, i32) {
    %c0_i32 = arith.constant 0 : i32
    %c0_i32_0 = arith.constant 0 : i32
    return %arg0, %c0_i32 : i32, i32
  }
  func.func @transform_3(%arg0: i32, %arg1: i32) -> (i32, i32) {
    %c0_i32 = arith.constant 0 : i32
    return %arg0, %arg1 : i32, i32
  }
}

</mosaic_0001>

<bundles_post_ra>
// kernel: tpu_custom_call.1
= control target key start
LH: loop header
LB: loop body
LE: loop exit
PB: predicated region body
PF: predicated region fallthrough
CT: control target
= control target key end

     0   :  { %v522_v2 = vmov 0   ;;  %s758_s0 = inlined_call_operand.vmem [shape: f32[128,128], index: 0, kind: input, shape index: {}]   ;;  %s759_s1 = inlined_call_operand.vmem [shape: f32[128,1], index: 1, kind: input, shape index: {}]   ;;  %s760_s2 = inlined_call_operand.vmem [shape: f32[128,1], index: 2, kind: input, shape index: {}]   ;;  %s761_s3 = inlined_call_operand.hbm [shape: bf16[128,128], index: 3, kind: output, shape index: {}]  }
   0x1   :  { %v33_v0 = vld [vmem:[%s759_s1 + $0x10] sm:$0xff]  ;;  %v31_v1 = vld [vmem:[%s759_s1] sm:$0xff]  ;;  %499 = vset.pattern.permute.xlu1 %v522_v2  ;;  %498 = vset.pattern.permute.xlu0 %v522_v2  ;;  %v34_v3 = vld [vmem:[%s759_s1 + $0x18] sm:$0xff] }
   0x2   :  { %91 = vperm.xlu1 %499, %v33_v0   ;;  %81 = vperm.xlu0 %498, %v31_v1   ;;  %v32_v4 = vld [vmem:[%s759_s1 + $0x8] sm:$0xff]  ;;  %v35_v6 = vld [vmem:[%s759_s1 + $0x20] sm:$0xff]  ;;  %v38_v7 = vld [vmem:[%s759_s1 + $0x38] sm:$0xff] }
   0x3   :  { %v36_v5 = vld [vmem:[%s759_s1 + $0x28] sm:$0xff]  ;;  %v37_v8 = vld [vmem:[%s759_s1 + $0x30] sm:$0xff] }
   0x6   :  { %96 = vperm.xlu1 %499, %v34_v3   ;;  %86 = vperm.xlu0 %498, %v32_v4  }
   0xa   :  { %106 = vperm.xlu1 %499, %v36_v5   ;;  %101 = vperm.xlu0 %498, %v35_v6  }
   0xe   :  { %116 = vperm.xlu1 %499, %v38_v7   ;;  %111 = vperm.xlu0 %498, %v37_v8  }
   0xf   :  { %8 = vsyncpa [#allocation3], 0  ;;  %v40_v9 = vld [vmem:[%s759_s1 + $0x48] sm:$0xff]  ;;  %v39_v10 = vld [vmem:[%s759_s1 + $0x40] sm:$0xff] }
  0x10   :  { %v42_v11 = vld [vmem:[%s759_s1 + $0x58] sm:$0xff]  ;;  %v41_v12 = vld [vmem:[%s759_s1 + $0x50] sm:$0xff]  ;;  %v44_v13 = vld [vmem:[%s759_s1 + $0x68] sm:$0xff] }
  0x11   :  { %v43_v14 = vld [vmem:[%s759_s1 + $0x60] sm:$0xff]  ;;  %v46_v15 = vld [vmem:[%s759_s1 + $0x78] sm:$0xff]  ;;  %v45_v16 = vld [vmem:[%s759_s1 + $0x70] sm:$0xff] }
  0x12   :  { %126 = vperm.xlu1 %499, %v40_v9   ;;  %121 = vperm.xlu0 %498, %v39_v10   ;;  %v48_v17 = vld [vmem:[%s760_s2 + $0x8] sm:$0xff]  ;;  %v47_v18 = vld [vmem:[%s760_s2] sm:$0xff]  ;;  %v50_v19 = vld [vmem:[%s760_s2 + $0x18] sm:$0xff] }
  0x13   :  { %v49_v20 = vld [vmem:[%s760_s2 + $0x10] sm:$0xff]  ;;  %v52_v21 = vld [vmem:[%s760_s2 + $0x28] sm:$0xff]  ;;  %v51_v22 = vld [vmem:[%s760_s2 + $0x20] sm:$0xff] }
  0x14   :  { %v54_v23 = vld [vmem:[%s760_s2 + $0x38] sm:$0xff]  ;;  %v53_v24 = vld [vmem:[%s760_s2 + $0x30] sm:$0xff]  ;;  %v56_v25 = vld [vmem:[%s760_s2 + $0x48] sm:$0xff] }
  0x15   :  { %v55_v26 = vld [vmem:[%s760_s2 + $0x40] sm:$0xff]  ;;  %v58_v27 = vld [vmem:[%s760_s2 + $0x58] sm:$0xff]  ;;  %v57_v28 = vld [vmem:[%s760_s2 + $0x50] sm:$0xff] }
  0x16   :  { %136 = vperm.xlu1 %499, %v42_v11   ;;  %131 = vperm.xlu0 %498, %v41_v12   ;;  %v60_v29 = vld [vmem:[%s760_s2 + $0x68] sm:$0xff]  ;;  %v59_v30 = vld [vmem:[%s760_s2 + $0x60] sm:$0xff]  ;;  %v62_v31 = vld [vmem:[%s760_s2 + $0x78] sm:$0xff] }
  0x17   :  { %v61_v32 = vld [vmem:[%s760_s2 + $0x70] sm:$0xff]  ;;  %v15_v45 = vld [vmem:[%s758_s0] sm:$0xff]  ;;  %v16_v46 = vld [vmem:[%s758_s0 + $0x8] sm:$0xff] }
  0x18   :  { %v63_v47 = vmin.f32 %v15_v45, 0.0  ;;  %v17_v50 = vld [vmem:[%s758_s0 + $0x10] sm:$0xff]  ;;  %v64_v51 = vmin.f32 %v16_v46, 0.0  ;;  %v18_v52 = vld [vmem:[%s758_s0 + $0x18] sm:$0xff]  ;;  %v20_v55 = vld [vmem:[%s758_s0 + $0x28] sm:$0xff]  ;;  %v192_v61 = vmax.f32 %v16_v46, 0.0 }
  0x19   :  { %v65_v53 = vmin.f32 %v17_v50, 0.0  ;;  %v19_v56 = vld [vmem:[%s758_s0 + $0x20] sm:$0xff]  ;;  %v66_v59 = vmin.f32 %v18_v52, 0.0  ;;  %v191_v62 = vmax.f32 %v15_v45, 0.0  ;;  %v68_v63 = vmin.f32 %v20_v55, 0.0  ;;  %v683_v1 = vld [vmem:[%s758_s0 + $0x38] sm:$0xff] }
  0x1a   :  { %146 = vperm.xlu1 %499, %v44_v13   ;;  %141 = vperm.xlu0 %498, %v43_v14   ;;  %v67_v0 = vmin.f32 %v19_v56, 0.0  ;;  %v688_v4 = vld [vmem:[%s758_s0 + $0x30] sm:$0xff]  ;;  %v194_v7 = vmax.f32 %v18_v52, 0.0  ;;  %v193_v8 = vmax.f32 %v17_v50, 0.0  ;;  %v70_v13 = vmin.f32 %v683_v1, 0.0 }
  0x1b   :  { %v69_v14 = vmin.f32 %v688_v4, 0.0 }
  0x1e   :  { %156 = vperm.xlu1 %499, %v46_v15   ;;  %151 = vperm.xlu0 %498, %v45_v16   ;;  %v695_v15 = vld [vmem:[%s758_s0 + $0x48] sm:$0xff] }
  0x22   :  { %214 = vperm.xlu1 %499, %v48_v17   ;;  %209 = vperm.xlu0 %498, %v47_v18   ;;  %v196_v18 = vmax.f32 %v20_v55, 0.0 }
  0x26   :  { %224 = vperm.xlu1 %499, %v50_v19   ;;  %219 = vperm.xlu0 %498, %v49_v20  }
  0x2a   :  { %234 = vperm.xlu1 %499, %v52_v21   ;;  %229 = vperm.xlu0 %498, %v51_v22   ;;  %v700_v22 = vld [vmem:[%s758_s0 + $0x40] sm:$0xff] }
  0x2e   :  { %244 = vperm.xlu1 %499, %v54_v23   ;;  %239 = vperm.xlu0 %498, %v53_v24  }
  0x32   :  { %254 = vperm.xlu1 %499, %v56_v25   ;;  %249 = vperm.xlu0 %498, %v55_v26   ;;  %v195_v25 = vmax.f32 %v19_v56, 0.0 }
  0x36   :  { %264 = vperm.xlu1 %499, %v58_v27   ;;  %259 = vperm.xlu0 %498, %v57_v28  }
  0x3a   :  { %274 = vperm.xlu1 %499, %v60_v29   ;;  %269 = vperm.xlu0 %498, %v59_v30   ;;  %v72_v30 = vmin.f32 %v695_v15, 0.0 }
  0x3e   :  { %284 = vperm.xlu1 %499, %v62_v31   ;;  %279 = vperm.xlu0 %498, %v61_v32   ;;  %v71_v31 = vmin.f32 %v700_v22, 0.0  ;;  %v707_v32 = vld [vmem:[%s758_s0 + $0x58] sm:$0xff] }
  0x7d   :  { %v92_v33 = vpop.permute.xlu1 %91  ;;  %v82_v34 = vpop.permute.xlu0 %81 }
  0x7e   :  { %v159_v54 = vmul.f32 %v82_v34, %v63_v47  ;;  %v161_v2 = vmul.f32 %v92_v33, %v65_v53 }
  0x80   :  { %v175_v3 = vsub.f32 %v15_v45, %v159_v54  ;;  %v177_v19 = vsub.f32 %v17_v50, %v161_v2  ;;  %v714_v45 = vld [vmem:[%s758_s0 + $0x50] sm:$0xff]  ;;  %v197_v50 = vmax.f32 %v688_v4, 0.0 }
  0x81   :  { %v97_v35 = vpop.permute.xlu1 %96  ;;  %v87_v36 = vpop.permute.xlu0 %86 }
  0x82   :  { %v160_v60 = vmul.f32 %v87_v36, %v64_v51  ;;  %v162_v9 = vmul.f32 %v97_v35, %v66_v59  ;;  %v198_v35 = vmax.f32 %v683_v1, 0.0  ;;  %v74_v59 = vmin.f32 %v707_v32, 0.0 }
  0x84   :  { %v176_v10 = vsub.f32 %v16_v46, %v160_v60  ;;  %v178_v26 = vsub.f32 %v18_v52, %v162_v9 }
  0x85   :  { %v107_v37 = vpop.permute.xlu1 %106  ;;  %v102_v38 = vpop.permute.xlu0 %101 }
  0x86   :  { %v164_v20 = vmul.f32 %v107_v37, %v68_v63  ;;  %v163_v21 = vmul.f32 %v102_v38, %v67_v0  ;;  %v27_v0 = vld [vmem:[%s758_s0 + $0x60] sm:$0xff] }
  0x88   :  { %v180_v36 = vsub.f32 %v20_v55, %v164_v20  ;;  %v179_v37 = vsub.f32 %v19_v56, %v163_v21  ;;  %v73_v55 = vmin.f32 %v714_v45, 0.0 }
  0x89   :  { %v642_v39 = vpop.permute.xlu1 %116  ;;  %v644_v40 = vpop.permute.xlu0 %111 }
  0x8a   :  { %v166_v38 = vmul.f32 %v642_v39, %v70_v13  ;;  %v165_v51 = vmul.f32 %v644_v40, %v69_v14  ;;  %v723_v39 = vld [vmem:[%s758_s0 + $0x68] sm:$0xff] }
  0x8d   :  { %v646_v41 = vpop.permute.xlu1 %126  ;;  %v648_v42 = vpop.permute.xlu0 %121 }
  0x8e   :  { %v168_v40 = vmul.f32 %v646_v41, %v72_v30  ;;  %v167_v63 = vmul.f32 %v648_v42, %v71_v31  ;;  %v30_v41 = vld [vmem:[%s758_s0 + $0x78] sm:$0xff] }
  0x90   :  { %v184_v13 = vsub.f32 %v695_v15, %v168_v40  ;;  %v183_v14 = vsub.f32 %v700_v22, %v167_v63 }
  0x91   :  { %v650_v43 = vpop.permute.xlu1 %136  ;;  %v652_v44 = vpop.permute.xlu0 %131 }
  0x92   :  { %v169_v20 = vmul.f32 %v652_v44, %v73_v55 }
  0x94   :  { %v185_v44 = vsub.f32 %v714_v45, %v169_v20 }
  0x95   :  { %v660_v48 = vpop.permute.xlu1 %146  ;;  %v662_v49 = vpop.permute.xlu0 %141 }
  0x99   :  { %v676_v57 = vpop.permute.xlu1 %156  ;;  %v678_v58 = vpop.permute.xlu0 %151 }
  0x9d   :  { %v215_v5 = vpop.permute.xlu1 %214  ;;  %v210_v6 = vpop.permute.xlu0 %209 }
  0x9e   :  { %v288_v11 = vmul.f32 %v215_v5, %v192_v61  ;;  %v287_v12 = vmul.f32 %v210_v6, %v191_v62  ;;  %v200_v61 = vmax.f32 %v695_v15, 0.0  ;;  %v182_v62 = vsub.f32 %v683_v1, %v166_v38 }
  0x9f   :  { %v199_v5 = vmax.f32 %v700_v22, 0.0  ;;  %v181_v6 = vsub.f32 %v688_v4, %v165_v51  ;;  %v75_v1 = vmin.f32 %v27_v0, 0.0  ;;  %v170_v4 = vmul.f32 %v650_v43, %v74_v59 }
  0xa0   :  { %v304_v16 = vsub.f32 %v176_v10, %v288_v11  ;;  %v303_v17 = vsub.f32 %v175_v3, %v287_v12  ;;  %v76_v10 = vmin.f32 %v723_v39, 0.0  ;;  %v202_v12 = vmax.f32 %v707_v32, 0.0 }
  0xa1   :  { %v225_v23 = vpop.permute.xlu1 %224  ;;  %v220_v24 = vpop.permute.xlu0 %219  ;;  %v204_v43 = vmax.f32 %v723_v39, 0.0 }
  0xa2   :  { %v450_v27 = vpack.c.bf16 %v304_v16, %v303_v17  ;;  %v290_v28 = vmul.f32 %v225_v23, %v194_v7  ;;  %v289_v29 = vmul.f32 %v220_v24, %v193_v8  ;;  %v29_v16 = vld [vmem:[%s758_s0 + $0x70] sm:$0xff]  ;;  %s523_s0 = smov [#allocation2]  }
  0xa3   :  { %s404_s23 = sshll.u32 %s523_s0, 4  ;;  %s405_s23 = int_to_ptr.vmem [resolvable:$true] %s404_s23 }
  0xa4   :  { %451 = vst [vmem:[#allocation2] sm:$0xff] %v450_v27   ;;  %v306_v33 = vsub.f32 %v178_v26, %v290_v28  ;;  %v305_v34 = vsub.f32 %v177_v19, %v289_v29  ;;  %v201_v19 = vmax.f32 %v714_v45, 0.0  ;;  %v77_v26 = vmin.f32 %v29_v16, 0.0  ;;  %s500_s24 = scalar_lea.vmem %s405_s23, 1024  ;;  %p505_p1 = scmp.lt.s32.totalorder %s405_s23, %s405_s23 }
  0xa5   :  { %v235_v46 = vpop.permute.xlu1 %234  ;;  %v230_v47 = vpop.permute.xlu0 %229  ;;  %v186_v27 = vsub.f32 %v707_v32, %v170_v4  ;;  %v172_v28 = vmul.f32 %v660_v48, %v76_v10  ;;  %v171_v29 = vmul.f32 %v662_v49, %v75_v1  ;;  %v205_v49 = vmax.f32 %v29_v16, 0.0  ;;  %p501_p0 = scmp.ne.s32.totalorder %s405_s23, %s500_s24  ;;  %p506_p2 = scmp.lt.s32.totalorder %s500_s24, %s500_s24 }
  0xa6   :  { %v455_v52 = vpack.c.bf16 %v306_v33, %v305_v34  ;;  %v292_v53 = vmul.f32 %v235_v46, %v196_v18  ;;  %v291_v54 = vmul.f32 %v230_v47, %v195_v25  ;;  %v78_v25 = vmin.f32 %v30_v41, 0.0 }
  0xa7   :  { %v203_v33 = vmax.f32 %v27_v0, 0.0  ;;  %v206_v46 = vmax.f32 %v30_v41, 0.0  ;;  %v188_v47 = vsub.f32 %v723_v39, %v172_v28  ;;  %p507_p3 = por %p506_p2, %p505_p1 }
  0xa8   :  { %487 = vst [vmem:[#allocation2 + $0x8] sm:$0xff] %v455_v52   ;;  %v308_v56 = vsub.f32 %v180_v36, %v292_v53  ;;  %v307_v60 = vsub.f32 %v179_v37, %v291_v54  ;;  %v174_v32 = vmul.f32 %v676_v57, %v78_v25  ;;  %v173_v52 = vmul.f32 %v678_v58, %v77_v26 }
  0xa9   :  { %v245_v2 = vpop.permute.xlu1 %244  ;;  %v240_v3 = vpop.permute.xlu0 %239  ;;  %p508_p4 = pnand %p507_p3, %p501_p0 }
  0xaa   :  { %v460_v7 = vpack.c.bf16 %v308_v56, %v307_v60  ;;  %v294_v8 = vmul.f32 %v245_v2, %v198_v35  ;;  %v293_v9 = vmul.f32 %v240_v3, %v197_v50  ;;  %v187_v50 = vsub.f32 %v27_v0, %v171_v29 }
  0xab   :  { %v190_v56 = vsub.f32 %v30_v41, %v174_v32 }
  0xac   :  { %488 = vst [vmem:[#allocation2 + $0x10] sm:$0xff] %v460_v7   ;;  %v310_v42 = vsub.f32 %v182_v62, %v294_v8  ;;  %v309_v11 = vsub.f32 %v181_v6, %v293_v9  ;;  %v189_v62 = vsub.f32 %v29_v16, %v173_v52 }
  0xad   :  { %v255_v17 = vpop.permute.xlu1 %254  ;;  %v250_v18 = vpop.permute.xlu0 %249 }
  0xae   :  { %v465_v21 = vpack.c.bf16 %v310_v42, %v309_v11  ;;  %v296_v23 = vmul.f32 %v255_v17, %v200_v61  ;;  %v295_v24 = vmul.f32 %v250_v18, %v199_v5 }
  0xb0   :  { %489 = vst [vmem:[#allocation2 + $0x18] sm:$0xff] %v465_v21   ;;  %v312_v15 = vsub.f32 %v184_v13, %v296_v23  ;;  %v311_v22 = vsub.f32 %v183_v14, %v295_v24 }
  0xb1   :  { %v265_v30 = vpop.permute.xlu1 %264  ;;  %v260_v31 = vpop.permute.xlu0 %259 }
  0xb2   :  { %v470_v34 = vpack.c.bf16 %v312_v15, %v311_v22  ;;  %v298_v35 = vmul.f32 %v265_v30, %v202_v12  ;;  %v297_v36 = vmul.f32 %v260_v31, %v201_v19 }
  0xb4   :  { %490 = vst [vmem:[#allocation2 + $0x20] sm:$0xff] %v470_v34   ;;  %v314_v37 = vsub.f32 %v186_v27, %v298_v35  ;;  %v313_v38 = vsub.f32 %v185_v44, %v297_v36 }
  0xb5   :  { %v275_v48 = vpop.permute.xlu1 %274  ;;  %v270_v51 = vpop.permute.xlu0 %269 }
  0xb6   :  { %v475_v53 = vpack.c.bf16 %v314_v37, %v313_v38  ;;  %v300_v54 = vmul.f32 %v275_v48, %v204_v43  ;;  %v299_v45 = vmul.f32 %v270_v51, %v203_v33 }
  0xb8   :  { %491 = vst [vmem:[#allocation2 + $0x28] sm:$0xff] %v475_v53   ;;  %v316_v59 = vsub.f32 %v188_v47, %v300_v54  ;;  %v315_v55 = vsub.f32 %v187_v50, %v299_v45 }
  0xb9   :  { %v285_v60 = vpop.permute.xlu1 %284  ;;  %v280_v61 = vpop.permute.xlu0 %279 }
  0xba   :  { %v480_v40 = vpack.c.bf16 %v316_v59, %v315_v55  ;;  %v302_v39 = vmul.f32 %v285_v60, %v206_v46  ;;  %v301_v63 = vmul.f32 %v280_v61, %v205_v49 }
  0xbc   :  { %492 = vst [vmem:[#allocation2 + $0x30] sm:$0xff] %v480_v40   ;;  %v318_v57 = vsub.f32 %v190_v56, %v302_v39  ;;  %v317_v0 = vsub.f32 %v189_v62, %v301_v63 }
  0xbe   :  { %v485_v58 = vpack.c.bf16 %v318_v57, %v317_v0 }
  0xc0   :  { %493 = vst [vmem:[#allocation2 + $0x38] sm:$0xff] %v485_v58  }
  0xc1   :  { %511 = shalt.err (!%p508_p4)
}
  0xc2   :  { %s524_s1 = smov 64   ;;  %s525_s25 = smov 4  }
  0xc3   :  { %410 = dma.vmem_to_hbm [thread:$0]  %s405_s23, 1024, %s761_s3, [#allocation3], %s524_s1, %s524_s1, %s525_s25  }
  0xc4   :  { %520 = dma.done.wait [#allocation3], 1024  }
  0xc5   :  { %521 = vsyncadd [#allocation3], 4294966272 }
  0xc6   :  { %414 = vsyncpa [#allocation3], 1 }

</bundles_post_ra>
